<compile_context>
chip_gen: v5e
topology: v5e:2x2
jax: 0.10.0
libtpu: 0.0.40
codegen_flags: <defaults>
</compile_context>

<pallas_src>
import functools

import jax
import jax.numpy as jnp
from jax.experimental import pallas as pl
from jax.experimental.pallas import tpu as pltpu

OUT_LANES = 8  # lane 0: logprob, lane 1: value, lane 2: entropy, rest zero.


def actor_critic_kernel(
    x_ref, act_ref,
    w1_ref, b1_ref, w2_ref, b2_ref, w3_ref, b3_ref,
    out_ref,
    *, action_dim,
):
    x = x_ref[...]                                                   # [TB, S]

    # Fused towers: 3 MXU pushes instead of 6 tiny ones.
    h = jnp.tanh(jnp.dot(x, w1_ref[...], preferred_element_type=jnp.float32)
                 + b1_ref[...])                                      # [TB, 2H]
    h = jnp.tanh(jnp.dot(h, w2_ref[...], preferred_element_type=jnp.float32)
                 + b2_ref[...])                                      # [TB, 2H]
    z = (jnp.dot(h, w3_ref[...], preferred_element_type=jnp.float32)
         + b3_ref[...])                                              # [TB, A+1]

    A = action_dim
    lane = jax.lax.broadcasted_iota(jnp.int32, z.shape, dimension=1)  # [TB, A+1]
    is_logit = lane < A          # lanes [0, A): actor logits
    is_value = lane == A         # lane A: state value

    # Numerically stable log-softmax over the actor lanes only (log space:
    # no divide; exp/log run on the EUP which is otherwise idle here).
    z_masked = jnp.where(is_logit, z, jnp.float32(-1e30))
    zmax = jnp.max(z_masked, axis=-1, keepdims=True)                 # [TB, 1]
    shifted = z - zmax
    ez = jnp.where(is_logit, jnp.exp(shifted), 0.0)
    denom = jnp.sum(ez, axis=-1, keepdims=True)                      # [TB, 1]
    log_denom = jnp.log(denom)
    logp_all = shifted - log_denom                                   # [TB, A+1]
    probs = jnp.where(is_logit, jnp.exp(logp_all), 0.0)

    # Categorical.log_prob(action): in-kernel one-hot via lane-iota compare.
    onehot = (lane == act_ref[...]).astype(jnp.float32)              # act: [TB,1]
    logp = jnp.sum(onehot * logp_all, axis=-1, keepdims=True)        # [TB, 1]
    # Categorical.entropy() = -sum p log p (probs==0 on non-logit lanes).
    ent = -jnp.sum(probs * logp_all, axis=-1, keepdims=True)         # [TB, 1]
    # State value: extract the value lane.
    value = jnp.sum(jnp.where(is_value, z, 0.0), axis=-1, keepdims=True)

    # Pack the three per-row scalars into one combined output tile.
    out_lane = jax.lax.broadcasted_iota(jnp.int32, out_ref.shape, dimension=1)
    out = jnp.where(out_lane == 0, logp,
          jnp.where(out_lane == 1, value,
          jnp.where(out_lane == 2, ent, 0.0)))
    out_ref[...] = out


def init_linear(key, fan_in, fan_out):
    # Mimic PyTorch nn.Linear default init: U(-1/sqrt(fan_in), 1/sqrt(fan_in)).
    kw, kb = jax.random.split(key)
    bound = 1.0 / jnp.sqrt(jnp.float32(fan_in))
    w = jax.random.uniform(kw, (fan_in, fan_out), jnp.float32, -bound, bound)
    b = jax.random.uniform(kb, (1, fan_out), jnp.float32, -bound, bound)
    return w, b


def init_params(key, state_dim, action_dim, n_latent_var):
    keys = jax.random.split(key, 7)
    # NOTE: `self.affine` in the PyTorch module is never used in act/evaluate;
    # initialized for parity but it does not enter the kernel.
    _affine = init_linear(keys[0], state_dim, n_latent_var)
    wa1, ba1 = init_linear(keys[1], state_dim, n_latent_var)
    wa2, ba2 = init_linear(keys[2], n_latent_var, n_latent_var)
    wa3, ba3 = init_linear(keys[3], n_latent_var, action_dim)
    wv1, bv1 = init_linear(keys[4], state_dim, n_latent_var)
    wv2, bv2 = init_linear(keys[5], n_latent_var, n_latent_var)
    wv3, bv3 = init_linear(keys[6], n_latent_var, 1)
    return dict(wa1=wa1, ba1=ba1, wa2=wa2, ba2=ba2, wa3=wa3, ba3=ba3,
                wv1=wv1, bv1=bv1, wv2=wv2, bv2=bv2, wv3=wv3, bv3=bv3)


@functools.partial(jax.jit, static_argnames=("action_dim", "block_b"))
def evaluate(params, state, action, *, action_dim, block_b=512):
    """Pallas implementation of ActorCritic.evaluate(state, action)."""
    B, state_dim = state.shape
    H = params["wa1"].shape[1]
    A = action_dim

    # Build fused weights (tiny; negligible per-call cost).
    f32 = jnp.float32
    w1 = jnp.concatenate([params["wa1"], params["wv1"]], axis=1)       # [S, 2H]
    b1 = jnp.concatenate([params["ba1"], params["bv1"]], axis=1)       # [1, 2H]
    zhh = jnp.zeros((H, H), f32)
    w2 = jnp.block([[params["wa2"], zhh], [zhh, params["wv2"]]])       # [2H, 2H]
    b2 = jnp.concatenate([params["ba2"], params["bv2"]], axis=1)       # [1, 2H]
    w3 = jnp.block([[params["wa3"], jnp.zeros((H, 1), f32)],
                    [jnp.zeros((H, A), f32), params["wv3"]]])          # [2H, A+1]
    b3 = jnp.concatenate([params["ba3"], params["bv3"]], axis=1)       # [1, A+1]

    action_col = action.reshape(B, 1).astype(jnp.int32)

    # Batch tiling: stream tiles through a pipelined grid; weights stay
    # resident in VMEM (constant index_map).
    TB = block_b if B > block_b else B
    grid = (pl.cdiv(B, TB),)

    x_spec = pl.BlockSpec((TB, state_dim), lambda i: (i, 0))
    a_spec = pl.BlockSpec((TB, 1), lambda i: (i, 0))

    def resident(arr):
        return pl.BlockSpec(arr.shape, lambda i: (0, 0))

    out_spec = pl.BlockSpec((TB, OUT_LANES), lambda i: (i, 0))

    out = pl.pallas_call(
        functools.partial(actor_critic_kernel, action_dim=A),
        out_shape=jax.ShapeDtypeStruct((B, OUT_LANES), jnp.float32),
        grid=grid,
        in_specs=[x_spec, a_spec,
                  resident(w1), resident(b1),
                  resident(w2), resident(b2),
                  resident(w3), resident(b3)],
        out_specs=out_spec,
        compiler_params=pltpu.CompilerParams(
            dimension_semantics=("parallel",)),
    )(state, action_col, w1, b1, w2, b2, w3, b3)

    # Matches: (action_logprobs, torch.squeeze(state_value), dist_entropy)
    return out[:, 0], out[:, 1], out[:, 2]


def evaluate_ref(params, state, action, *, action_dim):
    """Pure-JAX reference for numerical sanity check."""
    h = jnp.tanh(state @ params["wa1"] + params["ba1"])
    h = jnp.tanh(h @ params["wa2"] + params["ba2"])
    z = h @ params["wa3"] + params["ba3"]
    logp_all = jax.nn.log_softmax(z, axis=-1)
    probs = jax.nn.softmax(z, axis=-1)
    logp = jnp.take_along_axis(logp_all, action[:, None], axis=-1)[:, 0]
    ent = -jnp.sum(probs * logp_all, axis=-1)
    g = jnp.tanh(state @ params["wv1"] + params["bv1"])
    g = jnp.tanh(g @ params["wv2"] + params["bv2"])
    value = (g @ params["wv3"] + params["bv3"])[:, 0]
    return logp, value, ent


def _check(params, state, action, action_dim):
    logp, value, ent = evaluate(params, state, action, action_dim=action_dim)
    jax.block_until_ready((logp, value, ent))
    logp_r, value_r, ent_r = evaluate_ref(params, state, action,
                                          action_dim=action_dim)
    assert jnp.allclose(logp, logp_r, atol=5e-5), "logprob mismatch"
    assert jnp.allclose(value, value_r, atol=5e-5), "value mismatch"
    assert jnp.allclose(ent, ent_r, atol=5e-5), "entropy mismatch"


if __name__ == "__main__":
    # Small shapes consistent with the module: state_dim=4, action_dim=6, H=32.
    STATE_DIM, ACTION_DIM, N_LATENT = 4, 6, 32

    key = jax.random.PRNGKey(0)
    k_params, k_state1, k_act1, k_state2, k_act2 = jax.random.split(key, 5)
    params = init_params(k_params, STATE_DIM, ACTION_DIM, N_LATENT)

    # Small-batch case (act()-style; single grid step).
    B1 = 8
    state1 = jax.random.normal(k_state1, (B1, STATE_DIM), dtype=jnp.float32)
    action1 = jax.random.randint(k_act1, (B1,), 0, ACTION_DIM, dtype=jnp.int32)
    _check(params, state1, action1, ACTION_DIM)

    # Larger PPO-update-style batch exercising the multi-tile pipelined grid.
    B2 = 1024
    state2 = jax.random.normal(k_state2, (B2, STATE_DIM), dtype=jnp.float32)
    action2 = jax.random.randint(k_act2, (B2,), 0, ACTION_DIM, dtype=jnp.int32)
    _check(params, state2, action2, ACTION_DIM)

    # TODO(synk): act()'s Categorical.sample() / .item() (host-side stochastic
    # sampling + memory append) is not part of the kernel; evaluate() is.
    print("KERNEL_OK")
</pallas_src>

<mosaic_0001>
module attributes {stable_mosaic.version = 11 : i64} {
  func.func @actor_critic_kernel(%arg0: i32, %arg1: memref<8x4xf32, #tpu.memory_space<vmem>>, %arg2: memref<8x1xi32, #tpu.memory_space<vmem>>, %arg3: memref<4x64xf32, #tpu.memory_space<vmem>>, %arg4: memref<1x64xf32, #tpu.memory_space<vmem>>, %arg5: memref<64x64xf32, #tpu.memory_space<vmem>>, %arg6: memref<1x64xf32, #tpu.memory_space<vmem>>, %arg7: memref<64x7xf32, #tpu.memory_space<vmem>>, %arg8: memref<1x7xf32, #tpu.memory_space<vmem>>, %arg9: memref<8x8xf32, #tpu.memory_space<vmem>>) attributes {dimension_semantics = [#tpu.dimension_semantics<parallel>], iteration_bounds = array<i64: 1>, scalar_prefetch = 0 : i64, scratch_operands = 0 : i64, tpu.core_type = #tpu.core_type<tc>, window_params = [{transform_indices = @transform_0, window_bounds = array<i64: 8, 4>}, {transform_indices = @transform_1, window_bounds = array<i64: 8, 1>}, {pipeline_mode = #tpu.pipeline_mode<synchronous>, transform_indices = @transform_2, window_bounds = array<i64: 4, 64>}, {pipeline_mode = #tpu.pipeline_mode<synchronous>, transform_indices = @transform_3, window_bounds = array<i64: 1, 64>}, {pipeline_mode = #tpu.pipeline_mode<synchronous>, transform_indices = @transform_4, window_bounds = array<i64: 64, 64>}, {pipeline_mode = #tpu.pipeline_mode<synchronous>, transform_indices = @transform_5, window_bounds = array<i64: 1, 64>}, {pipeline_mode = #tpu.pipeline_mode<synchronous>, transform_indices = @transform_6, window_bounds = array<i64: 64, 7>}, {pipeline_mode = #tpu.pipeline_mode<synchronous>, transform_indices = @transform_7, window_bounds = array<i64: 1, 7>}, {transform_indices = @transform_8, window_bounds = array<i64: 8, 8>}]} {
    %c0 = arith.constant 0 : index
    %c0_0 = arith.constant 0 : index
    %0 = vector.load %arg1[%c0, %c0_0] : memref<8x4xf32, #tpu.memory_space<vmem>>, vector<8x4xf32>
    %c0_1 = arith.constant 0 : index
    %c0_2 = arith.constant 0 : index
    %1 = vector.load %arg3[%c0_1, %c0_2] : memref<4x64xf32, #tpu.memory_space<vmem>>, vector<4x64xf32>
    %cst = arith.constant dense<0.000000e+00> : vector<8x64xf32>
    %2 = tpu.matmul %0, %1, %cst {dimension_numbers = #tpu.dot_dimension_numbers<[1], [0], [0], [1], [0, 0, 1, 1], [], []>} : vector<8x4xf32>, vector<4x64xf32>, vector<8x64xf32> -> vector<8x64xf32>
    %c0_3 = arith.constant 0 : index
    %c0_4 = arith.constant 0 : index
    %3 = vector.load %arg4[%c0_3, %c0_4] : memref<1x64xf32, #tpu.memory_space<vmem>>, vector<1x64xf32>
    %4 = vector.broadcast %3 : vector<1x64xf32> to vector<8x64xf32>
    %5 = arith.addf %2, %4 : vector<8x64xf32>
    %6 = math.tanh %5 : vector<8x64xf32>
    %c0_5 = arith.constant 0 : index
    %c0_6 = arith.constant 0 : index
    %7 = vector.load %arg5[%c0_5, %c0_6] : memref<64x64xf32, #tpu.memory_space<vmem>>, vector<64x64xf32>
    %cst_7 = arith.constant dense<0.000000e+00> : vector<8x64xf32>
    %8 = tpu.matmul %6, %7, %cst_7 {dimension_numbers = #tpu.dot_dimension_numbers<[1], [0], [0], [1], [0, 0, 1, 1], [], []>} : vector<8x64xf32>, vector<64x64xf32>, vector<8x64xf32> -> vector<8x64xf32>
    %c0_8 = arith.constant 0 : index
    %c0_9 = arith.constant 0 : index
    %9 = vector.load %arg6[%c0_8, %c0_9] : memref<1x64xf32, #tpu.memory_space<vmem>>, vector<1x64xf32>
    %10 = vector.broadcast %9 : vector<1x64xf32> to vector<8x64xf32>
    %11 = arith.addf %8, %10 : vector<8x64xf32>
    %12 = math.tanh %11 : vector<8x64xf32>
    %c0_10 = arith.constant 0 : index
    %c0_11 = arith.constant 0 : index
    %13 = vector.load %arg7[%c0_10, %c0_11] : memref<64x7xf32, #tpu.memory_space<vmem>>, vector<64x7xf32>
    %cst_12 = arith.constant dense<0.000000e+00> : vector<8x7xf32>
    %14 = tpu.matmul %12, %13, %cst_12 {dimension_numbers = #tpu.dot_dimension_numbers<[1], [0], [0], [1], [0, 0, 1, 1], [], []>} : vector<8x64xf32>, vector<64x7xf32>, vector<8x7xf32> -> vector<8x7xf32>
    %c0_13 = arith.constant 0 : index
    %c0_14 = arith.constant 0 : index
    %15 = vector.load %arg8[%c0_13, %c0_14] : memref<1x7xf32, #tpu.memory_space<vmem>>, vector<1x7xf32>
    %16 = vector.broadcast %15 : vector<1x7xf32> to vector<8x7xf32>
    %17 = arith.addf %14, %16 : vector<8x7xf32>
    %18 = tpu.iota {dimensions = array<i32: 1>} : vector<8x7xi32>
    %c6_i32 = arith.constant 6 : i32
    %19 = vector.broadcast %c6_i32 : i32 to vector<8x7xi32>
    %20 = arith.cmpi slt, %18, %19 : vector<8x7xi32>
    %c6_i32_15 = arith.constant 6 : i32
    %21 = vector.broadcast %c6_i32_15 : i32 to vector<8x7xi32>
    %22 = arith.cmpi eq, %18, %21 : vector<8x7xi32>
    %cst_16 = arith.constant -1.000000e+30 : f32
    %23 = vector.broadcast %cst_16 : f32 to vector<8x7xf32>
    %24 = arith.select %20, %17, %23 : vector<8x7xi1>, vector<8x7xf32>
    %cst_17 = arith.constant dense<0xFF800000> : vector<8xf32>
    %25 = vector.multi_reduction <maximumf>, %24, %cst_17 [1] : vector<8x7xf32> to vector<8xf32>
    %26 = vector.shape_cast %25 : vector<8xf32> to vector<8x1xf32>
    %27 = vector.broadcast %26 : vector<8x1xf32> to vector<8x7xf32>
    %28 = arith.subf %17, %27 : vector<8x7xf32>
    %29 = math.exp %28 : vector<8x7xf32>
    %cst_18 = arith.constant 0.000000e+00 : f32
    %30 = vector.broadcast %cst_18 : f32 to vector<8x7xf32>
    %31 = arith.select %20, %29, %30 : vector<8x7xi1>, vector<8x7xf32>
    %cst_19 = arith.constant dense<0.000000e+00> : vector<8xf32>
    %32 = vector.multi_reduction <add>, %31, %cst_19 [1] : vector<8x7xf32> to vector<8xf32>
    %33 = vector.shape_cast %32 : vector<8xf32> to vector<8x1xf32>
    %34 = math.log %33 : vector<8x1xf32>
    %35 = vector.broadcast %34 : vector<8x1xf32> to vector<8x7xf32>
    %36 = arith.subf %28, %35 : vector<8x7xf32>
    %37 = math.exp %36 : vector<8x7xf32>
    %cst_20 = arith.constant 0.000000e+00 : f32
    %38 = vector.broadcast %cst_20 : f32 to vector<8x7xf32>
    %39 = arith.select %20, %37, %38 : vector<8x7xi1>, vector<8x7xf32>
    %c0_21 = arith.constant 0 : index
    %c0_22 = arith.constant 0 : index
    %40 = vector.load %arg2[%c0_21, %c0_22] : memref<8x1xi32, #tpu.memory_space<vmem>>, vector<8x1xi32>
    %41 = vector.broadcast %40 : vector<8x1xi32> to vector<8x7xi32>
    %42 = arith.cmpi eq, %18, %41 : vector<8x7xi32>
    %43 = arith.extui %42 : vector<8x7xi1> to vector<8x7xi32>
    %44 = arith.sitofp %43 : vector<8x7xi32> to vector<8x7xf32>
    %45 = arith.mulf %44, %36 : vector<8x7xf32>
    %cst_23 = arith.constant dense<0.000000e+00> : vector<8xf32>
    %46 = vector.multi_reduction <add>, %45, %cst_23 [1] : vector<8x7xf32> to vector<8xf32>
    %47 = vector.shape_cast %46 : vector<8xf32> to vector<8x1xf32>
    %48 = arith.mulf %39, %36 : vector<8x7xf32>
    %cst_24 = arith.constant dense<0.000000e+00> : vector<8xf32>
    %49 = vector.multi_reduction <add>, %48, %cst_24 [1] : vector<8x7xf32> to vector<8xf32>
    %50 = vector.shape_cast %49 : vector<8xf32> to vector<8x1xf32>
    %cst_25 = arith.constant 0.000000e+00 : f32
    %51 = vector.broadcast %cst_25 : f32 to vector<8x1xf32>
    %52 = arith.subf %51, %50 : vector<8x1xf32>
    %cst_26 = arith.constant 0.000000e+00 : f32
    %53 = vector.broadcast %cst_26 : f32 to vector<8x7xf32>
    %54 = arith.select %22, %17, %53 : vector<8x7xi1>, vector<8x7xf32>
    %cst_27 = arith.constant dense<0.000000e+00> : vector<8xf32>
    %55 = vector.multi_reduction <add>, %54, %cst_27 [1] : vector<8x7xf32> to vector<8xf32>
    %56 = vector.shape_cast %55 : vector<8xf32> to vector<8x1xf32>
    %57 = tpu.iota {dimensions = array<i32: 1>} : vector<8x8xi32>
    %c0_i32 = arith.constant 0 : i32
    %58 = vector.broadcast %c0_i32 : i32 to vector<8x8xi32>
    %59 = arith.cmpi eq, %57, %58 : vector<8x8xi32>
    %c1_i32 = arith.constant 1 : i32
    %60 = vector.broadcast %c1_i32 : i32 to vector<8x8xi32>
    %61 = arith.cmpi eq, %57, %60 : vector<8x8xi32>
    %c2_i32 = arith.constant 2 : i32
    %62 = vector.broadcast %c2_i32 : i32 to vector<8x8xi32>
    %63 = arith.cmpi eq, %57, %62 : vector<8x8xi32>
    %cst_28 = arith.constant 0.000000e+00 : f32
    %64 = vector.shape_cast %52 : vector<8x1xf32> to vector<8x1xf32>
    %65 = vector.broadcast %64 : vector<8x1xf32> to vector<8x8xf32>
    %66 = vector.broadcast %cst_28 : f32 to vector<8x8xf32>
    %67 = arith.select %63, %65, %66 : vector<8x8xi1>, vector<8x8xf32>
    %68 = vector.shape_cast %56 : vector<8x1xf32> to vector<8x1xf32>
    %69 = vector.broadcast %68 : vector<8x1xf32> to vector<8x8xf32>
    %70 = arith.select %61, %69, %67 : vector<8x8xi1>, vector<8x8xf32>
    %71 = vector.shape_cast %47 : vector<8x1xf32> to vector<8x1xf32>
    %72 = vector.broadcast %71 : vector<8x1xf32> to vector<8x8xf32>
    %73 = arith.select %59, %72, %70 : vector<8x8xi1>, vector<8x8xf32>
    %c0_29 = arith.constant 0 : index
    %c0_30 = arith.constant 0 : index
    %74 = vector.load %arg9[%c0_29, %c0_30] : memref<8x8xf32, #tpu.memory_space<vmem>>, vector<8x8xf32>
    tpu.vector_store %arg9[%c0_29, %c0_30], %73 {strides = array<i32>} : memref<8x8xf32, #tpu.memory_space<vmem>>, vector<8x8xf32>,
    return
  }
  func.func @transform_0(%arg0: i32) -> (i32, i32) {
    %c0_i32 = arith.constant 0 : i32
    %c0_i32_0 = arith.constant 0 : i32
    return %arg0, %c0_i32 : i32, i32
  }
  func.func @transform_1(%arg0: i32) -> (i32, i32) {
    %c0_i32 = arith.constant 0 : i32
    %c0_i32_0 = arith.constant 0 : i32
    return %arg0, %c0_i32 : i32, i32
  }
  func.func @transform_2(%arg0: i32) -> (i32, i32) {
    %c0_i32 = arith.constant 0 : i32
    %c0_i32_0 = arith.constant 0 : i32
    %c0_i32_1 = arith.constant 0 : i32
    return %c0_i32, %c0_i32_0 : i32, i32
  }
  func.func @transform_3(%arg0: i32) -> (i32, i32) {
    %c0_i32 = arith.constant 0 : i32
    %c0_i32_0 = arith.constant 0 : i32
    %c0_i32_1 = arith.constant 0 : i32
    return %c0_i32, %c0_i32_0 : i32, i32
  }
  func.func @transform_4(%arg0: i32) -> (i32, i32) {
    %c0_i32 = arith.constant 0 : i32
    %c0_i32_0 = arith.constant 0 : i32
    %c0_i32_1 = arith.constant 0 : i32
    return %c0_i32, %c0_i32_0 : i32, i32
  }
  func.func @transform_5(%arg0: i32) -> (i32, i32) {
    %c0_i32 = arith.constant 0 : i32
    %c0_i32_0 = arith.constant 0 : i32
    %c0_i32_1 = arith.constant 0 : i32
    return %c0_i32, %c0_i32_0 : i32, i32
  }
  func.func @transform_6(%arg0: i32) -> (i32, i32) {
    %c0_i32 = arith.constant 0 : i32
    %c0_i32_0 = arith.constant 0 : i32
    %c0_i32_1 = arith.constant 0 : i32
    return %c0_i32, %c0_i32_0 : i32, i32
  }
  func.func @transform_7(%arg0: i32) -> (i32, i32) {
    %c0_i32 = arith.constant 0 : i32
    %c0_i32_0 = arith.constant 0 : i32
    %c0_i32_1 = arith.constant 0 : i32
    return %c0_i32, %c0_i32_0 : i32, i32
  }
  func.func @transform_8(%arg0: i32) -> (i32, i32) {
    %c0_i32 = arith.constant 0 : i32
    %c0_i32_0 = arith.constant 0 : i32
    return %arg0, %c0_i32 : i32, i32
  }
}

</mosaic_0001>

<bundles_post_ra>
// kernel: evaluate.1
= control target key start
LH: loop header
LB: loop body
LE: loop exit
PB: predicated region body
PF: predicated region fallthrough
CT: control target
= control target key end

     0   :  { %vm39_vm0 = vcmask 1043456   ;;  %vm35_vm1 = vcmask 31744   ;;  %vm76_vm2 = vcmask 523264   ;;  %v136_v26 = vlaneseq  ;;  %s338_s2 = inlined_call_operand.vmem [shape: f32[4,64], index: 2, kind: input, shape index: {}]   ;;  %s339_s0 = inlined_call_operand.vmem [shape: f32[8,4], index: 0, kind: input, shape index: {}]   ;;  %s340_s4 = inlined_call_operand.vmem [shape: f32[64,64], index: 4, kind: input, shape index: {}]   ;;  %s341_s3 = inlined_call_operand.vmem [shape: f32[1,64], index: 3, kind: input, shape index: {}]   ;;  %s342_s5 = inlined_call_operand.vmem [shape: f32[1,64], index: 5, kind: input, shape index: {}]   ;;  %s343_s6 = inlined_call_operand.vmem [shape: f32[64,7], index: 6, kind: input, shape index: {}]   ;;  %s344_s7 = inlined_call_operand.vmem [shape: f32[1,7], index: 7, kind: input, shape index: {}]   ;;  %s345_s1 = inlined_call_operand.vmem [shape: s32[8,1], index: 1, kind: input, shape index: {}]   ;;  %s346_s8 = inlined_call_operand.vmem [shape: f32[8,8], index: 8, kind: output, shape index: {}]  }
   0x1   :  { %v30_v0 = vld [vmem:[%s338_s2] sm:$0xf]  ;;  %v71_v2 = vld [vmem:[%s340_s4 + $0x38] sm:$0xff]  ;;  %v70_v3 = vld [vmem:[%s340_s4 + $0x30] sm:$0xff]  ;;  %vm141_vm5 = vcmask 56320   ;;  %v212_v36 = vmov 0  }
   0x2   :  { %v29_v1 = vld [vmem:[%s339_s0] sm:$0xff]  ;;  %190 = vmatpush.msk.msra.mxu0 %vm39_vm0, %v30_v0  ;;  %88 = vmatpush.msra.mxu1 %v71_v2  ;;  %v69_v4 = vld [vmem:[%s340_s4 + $0x28] sm:$0xff]  ;;  %v67_v6 = vld [vmem:[%s340_s4 + $0x18] sm:$0xff]  ;;  %v137_v27 = vand.u32 127, %v136_v26  ;;  %v213_v47 = vmov 0.0   ;;  %vm184_vm10 = vcmask 64512  }
   0x3   :  { %191 = vmatmul.msk.f32.vlgmr.msra.gmra.mxu0 %vm35_vm1, %v29_v1  ;;  %v68_v5 = vld [vmem:[%s340_s4 + $0x20] sm:$0xff]  ;;  %v66_v7 = vld [vmem:[%s340_s4 + $0x10] sm:$0xff]  ;;  %v65_v8 = vld [vmem:[%s340_s4 + $0x8] sm:$0xff]  ;;  %197 = vset.pattern.permute.xlu1 %v212_v36 }
   0x4   :  { %89 = vmatpush.msra.mxu1 %v70_v3  ;;  %v64_v9 = vld [vmem:[%s340_s4] sm:$0xff]  ;;  %v108_v10 = vld [vmem:[%s343_s6 + $0x38] sm:$0xff]  ;;  %v107_v11 = vld [vmem:[%s343_s6 + $0x30] sm:$0xff]  ;;  %vm139_vm3 = vcmp.eq.s32.totalorder %v137_v27, 6  ;;  %vm138_vm4 = vcmp.lt.s32.totalorder %v137_v27, 6  ;;  %198 = vset.pattern.permute.xlu0 %v212_v36  ;;  %vm180_vm7 = vcmp.eq.s32.totalorder %v137_v27, 2 }
   0x5   :  { %124 = vmatpush.msra.mxu2 %v108_v10  ;;  %v106_v12 = vld [vmem:[%s343_s6 + $0x28] sm:$0xff]  ;;  %v199_v13 = vld [vmem:[%s341_s3] ss:$0 sm:$0xff]  ;;  %v104_v18 = vld [vmem:[%s343_s6 + $0x18] sm:$0xff]  ;;  %vm179_vm8 = vcmp.eq.s32.totalorder %v137_v27, 1  ;;  %vm178_vm9 = vcmp.eq.s32.totalorder %v137_v27, 0 }
   0x6   :  { %90 = vmatpush.msra.mxu1 %v69_v4  ;;  %v105_v17 = vld [vmem:[%s343_s6 + $0x20] sm:$0xff]  ;;  %v103_v19 = vld [vmem:[%s343_s6 + $0x10] sm:$0xff]  ;;  %v102_v20 = vld [vmem:[%s343_s6 + $0x8] sm:$0xff] }
   0x7   :  { %125 = vmatpush.msra.mxu2 %v107_v11  ;;  %v101_v21 = vld [vmem:[%s343_s6] sm:$0xff] }
   0x8   :  { %91 = vmatpush.msra.mxu1 %v68_v5  ;;  %v200_v22 = vld [vmem:[%s342_s5] ss:$0 sm:$0xff] }
   0x9   :  { %126 = vmatpush.msra.mxu2 %v106_v12  ;;  %v201_v28 = vld [vmem:[%s344_s7] ss:$0 sm:$0xff] }
   0xa   :  { %92 = vmatpush.msra.mxu1 %v67_v6  ;;  %v158_v35 = vld [vmem:[%s345_s1] sm:$0xff] }
   0xb   :  { %127 = vmatpush.msra.mxu2 %v105_v17  ;;  %160 = vperm.xlu1 %197, %v158_v35  }
   0xc   :  { %93 = vmatpush.msra.mxu1 %v66_v7 }
   0xd   :  { %128 = vmatpush.msra.mxu2 %v104_v18 }
   0xe   :  { %94 = vmatpush.msra.mxu1 %v65_v8 }
   0xf   :  { %129 = vmatpush.msra.mxu2 %v103_v19 }
  0x10   :  { %95 = vmatpush.msra.mxu1 %v64_v9 }
  0x11   :  { %130 = vmatpush.msra.mxu2 %v102_v20 }
  0x13   :  { %131 = vmatpush.msra.mxu2 %v101_v21 }
  0x7d   :  { %v161_v44 = vpop.permute.xlu1 %160 }
  0x7e   :  { %vm162_vm6 = vcmp.eq.s32.totalorder %v137_v27, %v161_v44 }
  0x7f   :  { %v194_v48 = vsel %vm162_vm6, 1.0, %v213_v47 }
  0x80   :  { %v60_v14 = vpop.f32.mrf.mxu0 }
  0x81   :  { %v61_v15 = vadd.f32 %v199_v13, %v60_v14 }
  0x83   :  { %202 = vtanh.f32 %v61_v15 }
  0x89   :  { %v203_v16 = vpop.eup %202 }
  0x8a   :  { %192 = vmatmul.msk.f32.vlgmr.msra.gmra.mxu1 %vm76_vm2, %v203_v16 }
 0x107   :  { %v97_v23 = vpop.f32.mrf.mxu1 }
 0x108   :  { %v98_v24 = vadd.f32 %v200_v22, %v97_v23 }
 0x10a   :  { %204 = vtanh.f32 %v98_v24 }
 0x110   :  { %v205_v25 = vpop.eup %204 }
 0x111   :  { %193 = vmatmul.msk.f32.vlgmr.msra.gmra.mxu2 %vm76_vm2, %v205_v25 }
 0x194   :  { %v133_v29 = vpop.f32.mrf.mxu2 }
 0x195   :  { %v134_v30 = vadd.f32 %v201_v28, %v133_v29 }
 0x197   :  { %v174_v31 = vsel %vm139_vm3, %v134_v30, 0.0  ;;  %v140_v32 = vsel %vm138_vm4, %v134_v30, -1e+30 }
 0x198   :  { %v175_v33 = vsel %vm141_vm5, %v174_v31, 0.0  ;;  %v142_v34 = vsel %vm141_vm5, %v140_v32, -inf }
 0x199   :  { %176 = vadd.xlane.f32.xlu2 %v175_v33  ;;  %143 = vmax.xlane.f32.xlu0 %v142_v34 }
 0x20c   :  { %v144_v37 = vpop.xlane.xlu0 %143  ;;  %v177_v57 = vpop.xlane.xlu2 %176 }
 0x20d   :  { %v145_v38 = vsub.f32 %v134_v30, %v144_v37 }
 0x20f   :  { %v146_v39 = vmul.f32 1.442695, %v145_v38 }
 0x211   :  { %206 = vpow2.f32 %v146_v39 }
 0x217   :  { %v207_v40 = vpop.eup %206 }
 0x218   :  { %v148_v41 = vsel %vm138_vm4, %v207_v40, 0.0 }
 0x219   :  { %v149_v42 = vsel %vm141_vm5, %v148_v41, 0.0 }
 0x21a   :  { %150 = vadd.xlane.f32.xlu0 %v149_v42 }
 0x28d   :  { %v151_v43 = vpop.xlane.xlu0 %150 }
 0x28e   :  { %208 = vlog2.f32 %v151_v43 }
 0x294   :  { %v209_v45 = vpop.eup %208 }
 0x295   :  { %v153_v46 = vmul.f32 0.6931472, %v209_v45 }
 0x297   :  { %v154_v49 = vsub.f32 %v145_v38, %v153_v46 }
 0x299   :  { %v155_v50 = vmul.f32 1.442695, %v154_v49  ;;  %v165_v51 = vmul.f32 %v194_v48, %v154_v49 }
 0x29b   :  { %210 = vpow2.f32 %v155_v50  ;;  %v166_v52 = vsel %vm141_vm5, %v165_v51, 0.0 }
 0x29c   :  { %167 = vadd.xlane.f32.xlu2 %v166_v52 }
 0x2a1   :  { %v211_v53 = vpop.eup %210 }
 0x2a2   :  { %v157_v54 = vsel %vm138_vm4, %v211_v53, 0.0 }
 0x2a3   :  { %v169_v55 = vmul.f32 %v157_v54, %v154_v49 }
 0x2a5   :  { %v170_v56 = vsel %vm141_vm5, %v169_v55, 0.0 }
 0x2a6   :  { %171 = vadd.xlane.f32.xlu1 %v170_v56 }
 0x30f   :  { %v168_v61 = vpop.xlane.xlu2 %167 }
 0x319   :  { %v172_v58 = vpop.xlane.xlu1 %171 }
 0x31a   :  { %v173_v59 = vsub.f32 0.0, %v172_v58 }
 0x31c   :  { %v181_v60 = vsel %vm180_vm7, %v173_v59, 0.0 }
 0x31d   :  { %v182_v62 = vsel %vm179_vm8, %v177_v57, %v181_v60 }
 0x31e   :  { %v183_v63 = vsel %vm178_vm9, %v168_v61, %v182_v62 }
 0x31f   :  { %185 = vst.msk [vmem:[%s346_s8] sm:$0xff] %vm184_vm10, %v183_v63 }

</bundles_post_ra>
